<compile_context>
chip_gen: v6e
topology: v6e:2x2x1
jax: 0.10.0
libtpu: 0.0.40
codegen_flags: <defaults>
</compile_context>

<pallas_src>
import functools

import jax
import jax.numpy as jnp
from jax.experimental import pallas as pl
from jax.experimental.pallas import tpu as pltpu

_LANE = 128


def _round_up(x: int, m: int) -> int:
    return (x + m - 1) // m * m


def _is_int_p(p: float) -> bool:
    p = float(p)
    return p.is_integer() and 1.0 <= p <= 16.0


def _pow_vpu(x, n: int):
    """x**n for integer n>=1 via exponentiation-by-squaring (VPU multiplies only)."""
    result = None
    base = x
    while n > 0:
        if n & 1:
            result = base if result is None else result * base
        n >>= 1
        if n:
            base = base * base
    return result


def _apply_pow(x, p: float):
    if _is_int_p(p):
        return _pow_vpu(x, int(float(p)))
    # Fallback for non-integer p: EUP log+exp pow.
    return x ** float(p)


def _gem_kernel(x_ref, o_ref, *, p: float, eps: float, hw: float, lane_chunks: int):
    # x_ref: (TM, HW) tile of flattened (B*C, H*W) input
    # o_ref: (TM, 1) per-row GeM-pooled output
    tm = x_ref.shape[0]
    if lane_chunks > 1:
        # VPU accumulation over 128-lane chunks, one XLU lane reduce at the end.
        acc = jnp.zeros((tm, _LANE), dtype=jnp.float32)
        for c in range(lane_chunks):  # static, fully unrolled
            xc = x_ref[:, c * _LANE:(c + 1) * _LANE].astype(jnp.float32)
            acc = acc + _apply_pow(jnp.maximum(xc, eps), p)
        s = jnp.sum(acc, axis=-1, keepdims=True)
    else:
        xc = jnp.maximum(x_ref[...].astype(jnp.float32), eps)
        s = jnp.sum(_apply_pow(xc, p), axis=-1, keepdims=True)
    m = s * (1.0 / hw)                       # mean over H*W
    # Final p-th root on the (TM, 1) reduced vector: negligible cost.
    o_ref[...] = (m ** (1.0 / p)).astype(o_ref.dtype)


def gem_pallas(x: jnp.ndarray, p: float = 3.0, eps: float = 1e-6) -> jnp.ndarray:
    """x: (B, C, H, W) -> (B, C, 1, 1), matching torch GeM forward."""
    B, C, H, W = x.shape
    N, HW = B * C, H * W
    x2d = x.reshape(N, HW)

    itemsize = jnp.dtype(x.dtype).itemsize
    # Sublane packing: 8 rows/vreg for 32-bit, 16 for bf16, 32 for 8-bit.
    row_align = 8 * max(1, 4 // itemsize)

    # Tile sizing:
    #  - keep the double-buffered input (2 * TM * HW * itemsize) under ~24 MiB
    #    so it fits scoped VMEM on every generation (v7x has 64 MiB physical),
    #  - keep roughly >= 8 grid steps when N is large so the "parallel" axis
    #    can be sharded across TensorCores.
    per_buf_budget = 12 * 1024 * 1024
    tm_vmem = max(row_align,
                  (per_buf_budget // max(1, HW * itemsize)) // row_align * row_align)
    tm_steps = _round_up(pl.cdiv(N, 8), row_align)
    TM = max(row_align, min(tm_vmem, tm_steps, 4096))

    lane_chunks = HW // _LANE if (HW % _LANE == 0 and HW > _LANE) else 1

    kernel = functools.partial(
        _gem_kernel, p=float(p), eps=float(eps), hw=float(HW),
        lane_chunks=lane_chunks,
    )

    p_int = _is_int_p(p)
    flops = (4 if p_int else 2) * N * HW
    transcendentals = (0 if p_int else 2 * N * HW) + 2 * N  # + final root
    cost = pl.CostEstimate(
        flops=flops,
        transcendentals=transcendentals,
        bytes_accessed=N * HW * itemsize + N * itemsize,
    )

    out2d = pl.pallas_call(
        kernel,
        out_shape=jax.ShapeDtypeStruct((N, 1), x.dtype),
        grid_spec=pltpu.PrefetchScalarGridSpec(
            num_scalar_prefetch=0,
            grid=(pl.cdiv(N, TM),),
            in_specs=[pl.BlockSpec((TM, HW), lambda i: (i, 0))],
            out_specs=pl.BlockSpec((TM, 1), lambda i: (i, 0)),
        ),
        compiler_params=pltpu.CompilerParams(
            dimension_semantics=("parallel",),
            vmem_limit_bytes=32 * 1024 * 1024,
        ),
        cost_estimate=cost,
    )(x2d)

    return out2d[:N].reshape(B, C, 1, 1)


def gem_reference(x: jnp.ndarray, p: float = 3.0, eps: float = 1e-6) -> jnp.ndarray:
    xc = jnp.maximum(x.astype(jnp.float32), eps)     # clamp(min=eps)
    m = jnp.mean(xc ** p, axis=(-2, -1), keepdims=True)
    return (m ** (1.0 / p)).astype(x.dtype)


if __name__ == "__main__":
    # GeM() defaults: p=3.0, eps=1e-6, p_trainable=False (no parameters).
    key = jax.random.PRNGKey(0)
    B, C, H, W = 2, 4, 16, 16
    x = jax.random.normal(key, (B, C, H, W), dtype=jnp.float32)

    out = jax.block_until_ready(gem_pallas(x, p=3.0, eps=1e-6))

    ref = gem_reference(x, p=3.0, eps=1e-6)
    assert out.shape == (B, C, 1, 1), out.shape
    assert jnp.allclose(out, ref, atol=1e-5, rtol=1e-5), (
        float(jnp.max(jnp.abs(out - ref)))
    )
    print("KERNEL_OK")
</pallas_src>

<mosaic_0001>
module attributes {stable_mosaic.version = 11 : i64} {
  func.func @_gem_kernel(%arg0: i32, %arg1: memref<8x256xf32, #tpu.memory_space<vmem>>, %arg2: memref<8x1xf32, #tpu.memory_space<vmem>>) attributes {dimension_semantics = [#tpu.dimension_semantics<parallel>], iteration_bounds = array<i64: 1>, scalar_prefetch = 0 : i64, scratch_operands = 0 : i64, tpu.core_type = #tpu.core_type<tc>, window_params = [{transform_indices = @transform_0, window_bounds = array<i64: 8, 256>}, {transform_indices = @transform_1, window_bounds = array<i64: 8, 1>}]} {
    %cst = arith.constant 0.000000e+00 : f32
    %0 = vector.broadcast %cst : f32 to vector<8x128xf32>
    %c0 = arith.constant 0 : index
    %c0_0 = arith.constant 0 : index
    %1 = vector.load %arg1[%c0, %c0_0] : memref<8x256xf32, #tpu.memory_space<vmem>>, vector<8x128xf32>
    %cst_1 = arith.constant 9.99999997E-7 : f32
    %2 = vector.broadcast %cst_1 : f32 to vector<8x128xf32>
    %3 = arith.maximumf %1, %2 : vector<8x128xf32>
    %4 = arith.mulf %3, %3 : vector<8x128xf32>
    %5 = arith.mulf %3, %4 : vector<8x128xf32>
    %6 = arith.addf %0, %5 : vector<8x128xf32>
    %c0_2 = arith.constant 0 : index
    %c128 = arith.constant 128 : index
    %7 = vector.load %arg1[%c0_2, %c128] : memref<8x256xf32, #tpu.memory_space<vmem>>, vector<8x128xf32>
    %cst_3 = arith.constant 9.99999997E-7 : f32
    %8 = vector.broadcast %cst_3 : f32 to vector<8x128xf32>
    %9 = arith.maximumf %7, %8 : vector<8x128xf32>
    %10 = arith.mulf %9, %9 : vector<8x128xf32>
    %11 = arith.mulf %9, %10 : vector<8x128xf32>
    %12 = arith.addf %6, %11 : vector<8x128xf32>
    %cst_4 = arith.constant dense<0.000000e+00> : vector<8xf32>
    %13 = vector.multi_reduction <add>, %12, %cst_4 [1] : vector<8x128xf32> to vector<8xf32>
    %14 = vector.shape_cast %13 : vector<8xf32> to vector<8x1xf32>
    %cst_5 = arith.constant 3.906250e-03 : f32
    %15 = vector.broadcast %cst_5 : f32 to vector<8x1xf32>
    %16 = arith.mulf %14, %15 : vector<8x1xf32>
    %cst_6 = arith.constant 0.333333343 : f32
    %17 = vector.broadcast %cst_6 : f32 to vector<8x1xf32>
    %18 = math.powf %16, %17 : vector<8x1xf32>
    %c0_7 = arith.constant 0 : index
    %c0_8 = arith.constant 0 : index
    %19 = vector.load %arg2[%c0_7, %c0_8] : memref<8x1xf32, #tpu.memory_space<vmem>>, vector<8x1xf32>
    tpu.vector_store %arg2[%c0_7, %c0_8], %18 {strides = array<i32>} : memref<8x1xf32, #tpu.memory_space<vmem>>, vector<8x1xf32>,
    return
  }
  func.func @transform_0(%arg0: i32) -> (i32, i32) {
    %c0_i32 = arith.constant 0 : i32
    %c0_i32_0 = arith.constant 0 : i32
    return %arg0, %c0_i32 : i32, i32
  }
  func.func @transform_1(%arg0: i32) -> (i32, i32) {
    %c0_i32 = arith.constant 0 : i32
    %c0_i32_0 = arith.constant 0 : i32
    return %arg0, %c0_i32 : i32, i32
  }
}

</mosaic_0001>

<bundles_post_ra>
// kernel: tpu_custom_call.1
= control target key start
LH: loop header
LB: loop body
LE: loop exit
PB: predicated region body
PF: predicated region fallthrough
CT: control target
= control target key end

     0   :  { %6 = vsyncpa [#allocation3], 0  ;;  %s86_s6 = smov [#allocation2]   ;;  %s103_s0 = inlined_call_operand.hbm [shape: f32[8,256], index: 0, kind: input, shape index: {}]   ;;  %s104_s1 = inlined_call_operand.vmem [shape: f32[8,1], index: 1, kind: output, shape index: {}]  }
   0x1   :  { %s13_s7 = sshll.u32 %s86_s6, 4  ;;  %s14_s7 = int_to_ptr.vmem [resolvable:$true] %s13_s7 }
   0x2   :  { %s72_s8 = scalar_lea.vmem %s14_s7, 256  ;;  %p77_p1 = scmp.lt.s32.totalorder %s14_s7, %s14_s7 }
   0x3   :  { %p73_p0 = scmp.ne.s32.totalorder %s14_s7, %s72_s8  ;;  %p78_p2 = scmp.lt.s32.totalorder %s72_s8, %s72_s8 }
   0x5   :  { %p79_p3 = por %p78_p2, %p77_p1 }
   0x7   :  { %p80_p4 = pnand %p79_p3, %p73_p0 }
   0x9   :  { %83 = shalt.err (!%p80_p4)
}
   0xa   :  { %16 = dma.hbm_to_vmem [thread:$0]  %s103_s0, 256, %s14_s7, [#allocation3]  }
   0xb   :  { %84 = dma.done.wait [#allocation3], 256  }
   0xc   :  { %85 = vsyncadd [#allocation3], 4294967040  ;;  %v20_v0 = vld [vmem:[#allocation2] sm:$0xff]  ;;  %v25_v1 = vld [vmem:[#allocation2 + $0x8] sm:$0xff]  ;;  %vm34_vm4 = vcmask 7168  }
   0xd   :  { %v21_v2 = vmax.f32 %v20_v0, 1e-06  ;;  %v26_v3 = vmax.f32 %v25_v1, 1e-06 }
   0xf   :  { %v22_v4 = vmul.f32 %v21_v2, %v21_v2  ;;  %v27_v5 = vmul.f32 %v26_v3, %v26_v3 }
  0x11   :  { %v23_v6 = vmul.f32 %v22_v4, %v21_v2  ;;  %v28_v7 = vmul.f32 %v27_v5, %v26_v3 }
  0x13   :  { %v29_v8 = vadd.f32 %v28_v7, %v23_v6 }
  0x15   :  { %30 = vadd.xlane.f32.xlu0 %v29_v8 }
  0x9e   :  { %v31_v9 = vpop.xlane.xlu0 %30 }
  0x9f   :  { %v32_v10 = vmul.f32 0.00390625, %v31_v9 }
  0xa1   :  { %v43_v11 = vand.u32 2147483647, %v32_v10  ;;  %v47_v14 = vand.u32 2147483648, %v32_v10  ;;  %vm42_vm2 = vcmp.lt.f32.partialorder %v32_v10, 0.0  ;;  %vm41_vm3 = vcmp.eq.f32.partialorder %v32_v10, 0.0 }
  0xa3   :  { %60 = vlog2.f32 %v43_v11  ;;  %vm51_vm0 = vweird.f32 %v43_v11  ;;  %vm53_vm1 = vcmp.eq.f32.partialorder %v43_v11, 0.0  ;;  %vm44_vm5 = vcmp.eq.f32.partialorder %v43_v11, inf }
  0xb0   :  { %v61_v12 = vpop.eup %60 }
  0xb1   :  { %v48_v13 = vmul.f32 0.33333334, %v61_v12 }
  0xb3   :  { %62 = vpow2.f32 %v48_v13 }
  0xc0   :  { %v63_v15 = vpop.eup %62 }
  0xc1   :  { %v50_v16 = vor.u32 %v63_v15, %v47_v14 }
  0xc3   :  { %v52_v17 = vsel %vm51_vm0, %v32_v10, %v50_v16 }
  0xc4   :  { %v55_v18 = vsel %vm53_vm1, %v47_v14, %v52_v17 }
  0xc5   :  { %v56_v19 = vsel %vm42_vm2, nan, %v55_v18 }
  0xc6   :  { %v57_v20 = vsel %vm41_vm3, 0.0, %v56_v19 }
  0xc7   :  { %v58_v21 = vsel %vm44_vm5, inf, %v57_v20 }
  0xc8   :  { %35 = vst.msk [vmem:[%s104_s1] sm:$0xff] %vm34_vm4, %v58_v21 }
  0xc9   :  { %40 = vsyncpa [#allocation3], 1 }

</bundles_post_ra>
